<compile_context>
chip_gen: v6e
topology: v6e:2x2x1
jax: 0.10.0
libtpu: 0.0.40
codegen_flags: <defaults>
</compile_context>

<pallas_src>
import jax
import jax.numpy as jnp
from jax.experimental import pallas as pl
from jax.experimental.pallas import tpu as pltpu


def _round_up(x: int, m: int) -> int:
    return (x + m - 1) // m * m


# --------------------------------------------------------------------------- #
# Kernel body
# --------------------------------------------------------------------------- #
def _mlp_gate_kernel(x_ref, w1_ref, b1_ref, w2_ref, b2_ref, o_ref):
    x = x_ref[...]                                        # (TB, N) f32

    # fc1 on the MXU: bf16 operands, f32 accumulate.
    h1 = jnp.dot(x.astype(jnp.bfloat16), w1_ref[...],
                 preferred_element_type=jnp.float32)      # (TB, Hp) f32
    h1 = jnp.maximum(h1 + b1_ref[...], 0.0)               # ReLU; padded lanes stay 0

    # fc2 (H -> 1) as VPU multiply + lane reduction instead of a 1-column matmul.
    s = jnp.sum(h1 * w2_ref[...], axis=-1, keepdims=True) + b2_ref[0, 0]  # (TB, 1)

    o_ref[...] = (s * x).astype(o_ref.dtype)              # gate in f32


# --------------------------------------------------------------------------- #
# Tile selection (HBM-bound: amortize per-step overhead, budget VMEM, feed 2 TCs)
# --------------------------------------------------------------------------- #
def _pick_tile_b(B: int, N: int, target_tile_bytes: int = 4 << 20) -> int:
    """Rows of x per grid step.

    * target ~4 MiB of x per step (double-buffered in/out + temporaries stays
      well under the 48 MiB VMEM budget, incl. v7x's 64 MiB physical VMEM),
    * keep >=2 grid steps when B >= 512 so v7x's second TensorCore gets work,
    * prefer 256-row multiples (full MXU pushes on v6e/v7x) unless that would
      inflate the batch padding noticeably (mem-bound kernel: padded rows cost
      real HBM traffic), else fall back to 16-row (bf16 sublane) granularity.
    """
    tb_cap = max(256, (target_tile_bytes // (4 * N)) // 256 * 256)
    if B <= 256:
        return max(8, _round_up(B, 8))
    steps = max(pl.cdiv(B, tb_cap), 2 if B >= 512 else 1)
    tb = pl.cdiv(B, steps)
    tb256 = _round_up(tb, 256)
    if steps * tb256 <= B + max(B // 8, 256):   # <=~12.5% (or 256 rows) padding
        return tb256
    return _round_up(tb, 16)


# --------------------------------------------------------------------------- #
# Wrapper
# --------------------------------------------------------------------------- #
def simple_number_based_n2(x, w1t_bf16, b1_p, w2_p, b2):
    """x: (B, N) f32.
    w1t_bf16: (N, Hp) bf16 (fc1 weight, transposed + lane-padded).
    b1_p:     (1, Hp) f32 (fc1 bias, lane-padded with zeros).
    w2_p:     (1, Hp) f32 (fc2 weight row, lane-padded with zeros).
    b2:       (1, 1)  f32 (fc2 bias scalar, lives in SMEM).
    """
    B, N = x.shape
    Hp = w1t_bf16.shape[1]
    assert N % 128 == 0, "x/out tiles must be lane-dense (N multiple of 128)"
    # TODO(synk): for very large N, add a K-tiling grid axis with a (tb, Hp) f32
    # accumulator instead of keeping the full (N, Hp) W1 resident in VMEM.

    tb = _pick_tile_b(B, N)
    Bp = _round_up(B, tb)
    if Bp != B:
        x = jnp.pad(x, ((0, Bp - B), (0, 0)))   # zero rows -> zero output rows, sliced off
    grid = (Bp // tb,)

    # Advisory cost for XLA's scheduler: one MXU matmul + epilogue, mem-bound.
    cost = pl.CostEstimate(
        flops=2 * Bp * N * Hp + 4 * Bp * Hp + 2 * Bp * N,
        transcendentals=0,
        bytes_accessed=2 * Bp * N * 4 + N * Hp * 2 + 2 * Hp * 4 + 4,
    )

    # Constant index_map -> never re-DMA'd -> single buffer saves VMEM for tb.
    resident = dict(pipeline_mode=pl.Buffered(1))

    out = pl.pallas_call(
        _mlp_gate_kernel,
        out_shape=jax.ShapeDtypeStruct((Bp, N), x.dtype),
        grid=grid,
        in_specs=[
            pl.BlockSpec((tb, N), lambda i: (i, 0)),                 # x tile (double-buffered)
            pl.BlockSpec((N, Hp), lambda i: (0, 0), **resident),     # W1 (resident)
            pl.BlockSpec((1, Hp), lambda i: (0, 0), **resident),     # b1 (resident)
            pl.BlockSpec((1, Hp), lambda i: (0, 0), **resident),     # W2 row (resident)
            pl.BlockSpec(memory_space=pltpu.MemorySpace.SMEM),       # b2 scalar
        ],
        out_specs=pl.BlockSpec((tb, N), lambda i: (i, 0)),
        compiler_params=pltpu.CompilerParams(
            dimension_semantics=("parallel",),          # batch axis across 2 TCs on v7x
            vmem_limit_bytes=48 * 1024 * 1024,          # > default scoped limit, <= v7x 64 MiB
        ),
        cost_estimate=cost,
    )(x, w1t_bf16, b1_p, w2_p, b2)

    return out[:B]


# --------------------------------------------------------------------------- #
# Parameter init / packing / references
# --------------------------------------------------------------------------- #
def init_params(key, n):
    """nn.Linear-style U(-1/sqrt(fan_in), 1/sqrt(fan_in)) init, f32 'true' params."""
    h = int(n * 0.7)
    ks = jax.random.split(key, 4)
    bound1 = 1.0 / jnp.sqrt(n)
    bound2 = 1.0 / jnp.sqrt(h)
    w1t = jax.random.uniform(ks[0], (n, h), jnp.float32, -bound1, bound1)  # (in, out)
    b1 = jax.random.uniform(ks[1], (1, h), jnp.float32, -bound1, bound1)
    w2 = jax.random.uniform(ks[2], (1, h), jnp.float32, -bound2, bound2)   # fc2 row
    b2 = jax.random.uniform(ks[3], (1, 1), jnp.float32, -bound2, bound2)
    return w1t, b1, w2, b2


def prepare_kernel_params(w1t, b1, w2, b2):
    """Lane-pad hidden dim to a multiple of 128; cast fc1 weight to bf16."""
    _, h = w1t.shape
    hp = _round_up(h, 128)
    pad = hp - h
    w1t_p = jnp.pad(w1t, ((0, 0), (0, pad))).astype(jnp.bfloat16)
    b1_p = jnp.pad(b1, ((0, 0), (0, pad)))
    w2_p = jnp.pad(w2, ((0, 0), (0, pad)))
    return w1t_p, b1_p, w2_p, b2


def reference_bf16(x, w1t, b1, w2, b2):
    """Same math as the kernel (bf16 MXU operands, f32 accumulate, f32 epilogue)."""
    h1 = jnp.dot(x.astype(jnp.bfloat16), w1t.astype(jnp.bfloat16),
                 preferred_element_type=jnp.float32) + b1
    h1 = jnp.maximum(h1, 0.0)
    s = jnp.sum(h1 * w2, axis=-1, keepdims=True) + b2[0, 0]
    return s * x


def reference_f32(x, w1t, b1, w2, b2):
    h1 = jnp.maximum(x @ w1t + b1, 0.0)
    s = h1 @ w2.T + b2[0, 0]
    return s * x


# --------------------------------------------------------------------------- #
# Main
# --------------------------------------------------------------------------- #
if __name__ == "__main__":
    # Small shapes consistent with the module: n=256 -> hidden int(0.7*256)=179 -> 1.
    N = 256
    key = jax.random.PRNGKey(0)
    kx, kp, kx2 = jax.random.split(key, 3)

    w1t, b1, w2, b2 = init_params(kp, N)
    w1t_p, b1_p, w2_p, b2_k = prepare_kernel_params(w1t, b1, w2, b2)

    # --- case 1: tiny batch (single grid step, no batch padding) ---
    B = 16
    x = jax.random.normal(kx, (B, N), jnp.float32)
    out = jax.block_until_ready(simple_number_based_n2(x, w1t_p, b1_p, w2_p, b2_k))
    assert out.shape == (B, N)

    ref_b = reference_bf16(x, w1t, b1, w2, b2)
    assert jnp.allclose(out, ref_b, atol=2e-3, rtol=2e-3), "mismatch vs. bf16 reference"

    ref_f = reference_f32(x, w1t, b1, w2, b2)
    scale = jnp.maximum(jnp.max(jnp.abs(ref_f)), 1.0)
    assert jnp.max(jnp.abs(out - ref_f)) / scale < 5e-2, "mismatch vs. f32 reference"

    # --- case 2: exercises the multi-step ("parallel") grid + batch padding path ---
    B2 = 532
    x2 = jax.random.normal(kx2, (B2, N), jnp.float32)
    out2 = jax.block_until_ready(simple_number_based_n2(x2, w1t_p, b1_p, w2_p, b2_k))
    assert out2.shape == (B2, N)
    ref2 = reference_bf16(x2, w1t, b1, w2, b2)
    assert jnp.allclose(out2, ref2, atol=2e-3, rtol=2e-3), "mismatch on padded multi-step grid"

    print("KERNEL_OK")
</pallas_src>

<mosaic_0001>
module attributes {stable_mosaic.version = 11 : i64} {
  func.func @_mlp_gate_kernel(%arg0: i32, %arg1: memref<16x256xf32, #tpu.memory_space<vmem>>, %arg2: memref<256x256xbf16, #tpu.memory_space<vmem>>, %arg3: memref<1x256xf32, #tpu.memory_space<vmem>>, %arg4: memref<1x256xf32, #tpu.memory_space<vmem>>, %arg5: memref<1x1xf32, #tpu.memory_space<smem>>, %arg6: memref<16x256xf32, #tpu.memory_space<vmem>>) attributes {dimension_semantics = [#tpu.dimension_semantics<parallel>], iteration_bounds = array<i64: 1>, scalar_prefetch = 0 : i64, scratch_operands = 0 : i64, tpu.core_type = #tpu.core_type<tc>, window_params = [{transform_indices = @transform_0, window_bounds = array<i64: 16, 256>}, {pipeline_mode = #tpu.pipeline_mode<synchronous>, transform_indices = @transform_1, window_bounds = array<i64: 256, 256>}, {pipeline_mode = #tpu.pipeline_mode<synchronous>, transform_indices = @transform_2, window_bounds = array<i64: 1, 256>}, {pipeline_mode = #tpu.pipeline_mode<synchronous>, transform_indices = @transform_3, window_bounds = array<i64: 1, 256>}, {transform_indices = @transform_4, window_bounds = array<i64: 1, 1>}, {transform_indices = @transform_5, window_bounds = array<i64: 16, 256>}]} {
    %c0 = arith.constant 0 : index
    %c0_0 = arith.constant 0 : index
    %0 = vector.load %arg1[%c0, %c0_0] : memref<16x256xf32, #tpu.memory_space<vmem>>, vector<16x256xf32>
    %1 = arith.truncf %0 : vector<16x256xf32> to vector<16x256xbf16>
    %c0_1 = arith.constant 0 : index
    %c0_2 = arith.constant 0 : index
    %2 = vector.load %arg2[%c0_1, %c0_2] : memref<256x256xbf16, #tpu.memory_space<vmem>>, vector<256x256xbf16>
    %cst = arith.constant dense<0.000000e+00> : vector<16x256xf32>
    %3 = tpu.matmul %1, %2, %cst {dimension_numbers = #tpu.dot_dimension_numbers<[1], [0], [0], [1], [0, 0, 1, 1], [], []>} : vector<16x256xbf16>, vector<256x256xbf16>, vector<16x256xf32> -> vector<16x256xf32>
    %c0_3 = arith.constant 0 : index
    %c0_4 = arith.constant 0 : index
    %4 = vector.load %arg3[%c0_3, %c0_4] : memref<1x256xf32, #tpu.memory_space<vmem>>, vector<1x256xf32>
    %5 = vector.broadcast %4 : vector<1x256xf32> to vector<16x256xf32>
    %6 = arith.addf %3, %5 : vector<16x256xf32>
    %cst_5 = arith.constant 0.000000e+00 : f32
    %7 = vector.broadcast %cst_5 : f32 to vector<16x256xf32>
    %8 = arith.maximumf %6, %7 : vector<16x256xf32>
    %c0_6 = arith.constant 0 : index
    %c0_7 = arith.constant 0 : index
    %9 = vector.load %arg4[%c0_6, %c0_7] : memref<1x256xf32, #tpu.memory_space<vmem>>, vector<1x256xf32>
    %10 = vector.broadcast %9 : vector<1x256xf32> to vector<16x256xf32>
    %11 = arith.mulf %8, %10 : vector<16x256xf32>
    %cst_8 = arith.constant dense<0.000000e+00> : vector<16xf32>
    %12 = vector.multi_reduction <add>, %11, %cst_8 [1] : vector<16x256xf32> to vector<16xf32>
    %13 = vector.shape_cast %12 : vector<16xf32> to vector<16x1xf32>
    %c0_9 = arith.constant 0 : index
    %c0_10 = arith.constant 0 : index
    %14 = memref.load %arg5[%c0_9, %c0_10] : memref<1x1xf32, #tpu.memory_space<smem>>
    %15 = vector.broadcast %14 : f32 to vector<16x1xf32>
    %16 = arith.addf %13, %15 : vector<16x1xf32>
    %17 = vector.broadcast %16 : vector<16x1xf32> to vector<16x256xf32>
    %18 = arith.mulf %17, %0 : vector<16x256xf32>
    %c0_11 = arith.constant 0 : index
    %c0_12 = arith.constant 0 : index
    %19 = vector.load %arg6[%c0_11, %c0_12] : memref<16x256xf32, #tpu.memory_space<vmem>>, vector<16x256xf32>
    tpu.vector_store %arg6[%c0_11, %c0_12], %18 {strides = array<i32>} : memref<16x256xf32, #tpu.memory_space<vmem>>, vector<16x256xf32>,
    return
  }
  func.func @transform_0(%arg0: i32) -> (i32, i32) {
    %c0_i32 = arith.constant 0 : i32
    %c0_i32_0 = arith.constant 0 : i32
    return %arg0, %c0_i32 : i32, i32
  }
  func.func @transform_1(%arg0: i32) -> (i32, i32) {
    %c0_i32 = arith.constant 0 : i32
    %c0_i32_0 = arith.constant 0 : i32
    %c0_i32_1 = arith.constant 0 : i32
    return %c0_i32, %c0_i32_0 : i32, i32
  }
  func.func @transform_2(%arg0: i32) -> (i32, i32) {
    %c0_i32 = arith.constant 0 : i32
    %c0_i32_0 = arith.constant 0 : i32
    %c0_i32_1 = arith.constant 0 : i32
    return %c0_i32, %c0_i32_0 : i32, i32
  }
  func.func @transform_3(%arg0: i32) -> (i32, i32) {
    %c0_i32 = arith.constant 0 : i32
    %c0_i32_0 = arith.constant 0 : i32
    %c0_i32_1 = arith.constant 0 : i32
    return %c0_i32, %c0_i32_0 : i32, i32
  }
  func.func @transform_4(%arg0: i32) -> (i32, i32) {
    %c0_i32 = arith.constant 0 : i32
    %c0_i32_0 = arith.constant 0 : i32
    %c0_i32_1 = arith.constant 0 : i32
    return %c0_i32, %c0_i32_0 : i32, i32
  }
  func.func @transform_5(%arg0: i32) -> (i32, i32) {
    %c0_i32 = arith.constant 0 : i32
    %c0_i32_0 = arith.constant 0 : i32
    return %arg0, %c0_i32 : i32, i32
  }
}

</mosaic_0001>

<bundles_post_ra>
// kernel: tpu_custom_call.1
= control target key start
LH: loop header
LB: loop body
LE: loop exit
PB: predicated region body
PF: predicated region fallthrough
CT: control target
= control target key end

     0   :  { %11 = vsyncpa [#allocation4], 0  ;;  %s581_s0 = inlined_call_operand.hbm [shape: f32[16,256], index: 0, kind: input, shape index: {}]   ;;  %s582_s1 = inlined_call_operand.hbm [shape: bf16[256,256], index: 1, kind: input, shape index: {}]   ;;  %s583_s2 = inlined_call_operand.vmem [shape: f32[1,256], index: 2, kind: input, shape index: {}]   ;;  %s584_s3 = inlined_call_operand.vmem [shape: f32[1,256], index: 3, kind: input, shape index: {}]   ;;  %s585_s4 = inlined_call_operand.<no memory space> [shape: f32[1,1], index: 4, kind: input, shape index: {}]   ;;  %s586_s5 = inlined_call_operand.hbm [shape: f32[16,256], index: 5, kind: output, shape index: {}]  }
   0x1   :  { %12 = vsyncpa [#allocation7], 0 }
   0x2   :  { %13 = vsyncpa [#allocation5], 0  ;;  %s512_s18 = smov [#allocation3]  }
   0x3   :  { %s19_s19 = sshll.u32 %s512_s18, 4  ;;  %s20_s19 = int_to_ptr.vmem [resolvable:$true] %s19_s19 }
   0x4   :  { %s454_s20 = scalar_lea.vmem %s20_s19, 512  ;;  %p459_p1 = scmp.lt.s32.totalorder %s20_s19, %s20_s19 }
   0x5   :  { %p455_p0 = scmp.ne.s32.totalorder %s20_s19, %s454_s20  ;;  %p460_p2 = scmp.lt.s32.totalorder %s454_s20, %s454_s20 }
   0x7   :  { %p461_p3 = por %p460_p2, %p459_p1 }
   0x9   :  { %p462_p4 = pnand %p461_p3, %p455_p0 }
   0xb   :  { %465 = shalt.err (!%p462_p4)
}
   0xc   :  { %s513_s21 = smov 256   ;;  %s514_s22 = smov 16  }
   0xd   :  { %25 = dma.hbm_to_vmem [thread:$0]  %s581_s0, 512, %s20_s19, [#allocation4], %s513_s21, %s513_s21, %s514_s22  }
   0xe   :  { %s515_s25 = smov [#allocation6]  }
   0xf   :  { %s31_s26 = sshll.u32 %s515_s25, 4  ;;  %s32_s26 = int_to_ptr.vmem [resolvable:$true] %s31_s26 }
  0x10   :  { %s474_s27 = scalar_lea.vmem %s32_s26, 4096  ;;  %p479_p6 = scmp.lt.s32.totalorder %s32_s26, %s32_s26 }
  0x11   :  { %p475_p5 = scmp.ne.s32.totalorder %s32_s26, %s474_s27  ;;  %p480_p7 = scmp.lt.s32.totalorder %s474_s27, %s474_s27 }
  0x13   :  { %p481_p8 = por %p480_p7, %p479_p6 }
  0x15   :  { %p482_p9 = pnand %p481_p8, %p475_p5 }
  0x17   :  { %485 = shalt.err (!%p482_p9)
}
  0x18   :  { %s516_s28 = smov 128   ;;  %s517_s29 = smov 8  }
  0x19   :  { %37 = dma.hbm_to_vmem [thread:$0]  %s582_s1, 4096, %s32_s26, [#allocation7], %s516_s28, %s516_s28, %s517_s29  }
  0x1a   :  { %506 = dma.done.wait [#allocation4], 512  }
  0x1b   :  { %507 = vsyncadd [#allocation4], 4294966784 }
  0x1c   :  { %508 = dma.done.wait [#allocation7], 4096  }
  0x1d   :  { %509 = vsyncadd [#allocation7], 4294963200  ;;  %v398_v0 = vld [vmem:[#allocation6 + $0x74] ss:$8 sps:$4 sm:$0xff]   ;;  %v400_v1 = vld [vmem:[#allocation6 + $0x70] ss:$8 sps:$4 sm:$0xff]   ;;  %v90_v38 = vlaneseq }
  0x1e   :  { %260 = vmatprep.subr.bf16.mxu0 %v398_v0  ;;  %v401_v2 = vld [vmem:[#allocation6 + $0x64] ss:$8 sps:$4 sm:$0xff]   ;;  %v403_v3 = vld [vmem:[#allocation6 + $0x60] ss:$8 sps:$4 sm:$0xff]   ;;  %v404_v4 = vld [vmem:[#allocation6 + $0x54] ss:$8 sps:$4 sm:$0xff]  }
  0x1f   :  { %261 = vmatpush1.bf16.msra.mxu0 %v400_v1  ;;  %v406_v5 = vld [vmem:[#allocation6 + $0x50] ss:$8 sps:$4 sm:$0xff]   ;;  %v407_v6 = vld [vmem:[#allocation6 + $0x44] ss:$8 sps:$4 sm:$0xff]   ;;  %v409_v7 = vld [vmem:[#allocation6 + $0x40] ss:$8 sps:$4 sm:$0xff]  }
  0x20   :  { %262 = vmatprep.subr.bf16.mxu0 %v401_v2  ;;  %v410_v8 = vld [vmem:[#allocation6 + $0x34] ss:$8 sps:$4 sm:$0xff]   ;;  %v412_v9 = vld [vmem:[#allocation6 + $0x30] ss:$8 sps:$4 sm:$0xff]   ;;  %v413_v10 = vld [vmem:[#allocation6 + $0x24] ss:$8 sps:$4 sm:$0xff]   ;;  %v330_v2 = vstv %s585_s4 }
  0x21   :  { %v415_v11 = vld [vmem:[#allocation6 + $0x20] ss:$8 sps:$4 sm:$0xff]   ;;  %v416_v12 = vld [vmem:[#allocation6 + $0x14] ss:$8 sps:$4 sm:$0xff]   ;;  %v418_v16 = vld [vmem:[#allocation6 + $0x10] ss:$8 sps:$4 sm:$0xff]  }
  0x22   :  { %v558_v13 = vld [vmem:[#allocation3 + $0x8] sm:$0xff]  ;;  %v560_v14 = vld [vmem:[#allocation3 + $0x18] sm:$0xff]  ;;  %v50_v35 = vld [vmem:[#allocation3] sm:$0xff]  ;;  %v91_v39 = vshrl.u32 %v90_v38, 7  ;;  %s518_s9 = smov [#allocation8]  }
  0x23   :  { %263 = vmatpush1.bf16.msra.mxu0 %v403_v3  ;;  %v55_v15 = vpack.c.bf16 %v560_v14, %v558_v13  ;;  %v419_v17 = vld [vmem:[#allocation6 + $0x4] ss:$8 sps:$4 sm:$0xff]   ;;  %v421_v18 = vld [vmem:[#allocation6] ss:$8 sps:$4 sm:$0xff]   ;;  %v422_v19 = vld [vmem:[#allocation6 + $0xf4] ss:$8 sps:$4 sm:$0xff]  }
  0x24   :  { %264 = vmatprep.subr.bf16.mxu0 %v404_v4  ;;  %v424_v20 = vld [vmem:[#allocation6 + $0xf0] ss:$8 sps:$4 sm:$0xff]   ;;  %v425_v21 = vld [vmem:[#allocation6 + $0xe4] ss:$8 sps:$4 sm:$0xff]   ;;  %v427_v22 = vld [vmem:[#allocation6 + $0xe0] ss:$8 sps:$4 sm:$0xff]  }
  0x25   :  { %292 = vmatprep.mubr.bf16.mxu0 %v55_v15  ;;  %v428_v23 = vld [vmem:[#allocation6 + $0xd4] ss:$8 sps:$4 sm:$0xff]   ;;  %v430_v24 = vld [vmem:[#allocation6 + $0xd0] ss:$8 sps:$4 sm:$0xff]   ;;  %v431_v25 = vld [vmem:[#allocation6 + $0xc4] ss:$8 sps:$4 sm:$0xff]  }
  0x26   :  { %v433_v26 = vld [vmem:[#allocation6 + $0xc0] ss:$8 sps:$4 sm:$0xff]   ;;  %v434_v27 = vld [vmem:[#allocation6 + $0xb4] ss:$8 sps:$4 sm:$0xff]   ;;  %v436_v28 = vld [vmem:[#allocation6 + $0xb0] ss:$8 sps:$4 sm:$0xff]  }
  0x27   :  { %265 = vmatpush1.bf16.msra.mxu0 %v406_v5  ;;  %v437_v29 = vld [vmem:[#allocation6 + $0xa4] ss:$8 sps:$4 sm:$0xff]   ;;  %v439_v30 = vld [vmem:[#allocation6 + $0xa0] ss:$8 sps:$4 sm:$0xff]   ;;  %v440_v31 = vld [vmem:[#allocation6 + $0x94] ss:$8 sps:$4 sm:$0xff]  }
  0x28   :  { %266 = vmatprep.subr.bf16.mxu0 %v407_v6  ;;  %v442_v32 = vld [vmem:[#allocation6 + $0x90] ss:$8 sps:$4 sm:$0xff]   ;;  %v443_v33 = vld [vmem:[#allocation6 + $0x84] ss:$8 sps:$4 sm:$0xff]   ;;  %v445_v34 = vld [vmem:[#allocation6 + $0x80] ss:$8 sps:$4 sm:$0xff]  }
  0x29   :  { %v52_v36 = vld [vmem:[#allocation3 + $0x10] sm:$0xff]  ;;  %v92_v40 = vsub.s32 0, %v91_v39  ;;  %v88_v41 = vld [vmem:[%s583_s2] sm:$0x3]  ;;  %v96_v42 = vsub.s32 1, %v91_v39  ;;  %s346_s10 = sshll.u32 %s518_s9, 4  ;;  %s347_s10 = int_to_ptr.vmem [resolvable:$true] %s346_s10 }
  0x2a   :  { %v54_v37 = vpack.c.bf16 %v52_v36, %v50_v35  ;;  %v307_v46 = vld [vmem:[%s584_s3] sm:$0x3]  ;;  %s486_s11 = scalar_lea.vmem %s347_s10, 512  ;;  %p491_p11 = scmp.lt.s32.totalorder %s347_s10, %s347_s10 }
  0x2b   :  { %267 = vmatpush1.bf16.msra.mxu0 %v409_v7  ;;  %v93_v43 = vrot.slane %v88_v41, %v92_v40  ;;  %v97_v44 = vrot.slane %v88_v41, %v96_v42  ;;  %v312_v51 = vrot.slane %v307_v46, %v92_v40  ;;  %v316_v52 = vrot.slane %v307_v46, %v96_v42  ;;  %p487_p10 = scmp.ne.s32.totalorder %s347_s10, %s486_s11  ;;  %p492_p12 = scmp.lt.s32.totalorder %s486_s11, %s486_s11 }
  0x2c   :  { %268 = vmatprep.subr.bf16.mxu0 %v410_v8 }
  0x2d   :  { %p493_p13 = por %p492_p12, %p491_p11 }
  0x2f   :  { %269 = vmatpush1.bf16.msra.mxu0 %v412_v9  ;;  %p494_p0 = pnand %p493_p13, %p487_p10 }
  0x30   :  { %270 = vmatprep.subr.bf16.mxu0 %v413_v10 }
  0x33   :  { %271 = vmatpush1.bf16.msra.mxu0 %v415_v11 }
  0x34   :  { %272 = vmatprep.subr.bf16.mxu0 %v416_v12 }
  0x37   :  { %273 = vmatpush1.bf16.msra.mxu0 %v418_v16 }
  0x38   :  { %274 = vmatprep.subr.bf16.mxu0 %v419_v17 }
  0x3b   :  { %275 = vmatpush1.bf16.msra.mxu0 %v421_v18 }
  0x3c   :  { %276 = vmatprep.subr.bf16.mxu0 %v422_v19 }
  0x3f   :  { %277 = vmatpush2.bf16.msra.mxu0 %v424_v20 }
  0x40   :  { %278 = vmatprep.subr.bf16.mxu0 %v425_v21 }
  0x43   :  { %279 = vmatpush2.bf16.msra.mxu0 %v427_v22 }
  0x44   :  { %280 = vmatprep.subr.bf16.mxu0 %v428_v23 }
  0x47   :  { %281 = vmatpush2.bf16.msra.mxu0 %v430_v24 }
  0x48   :  { %282 = vmatprep.subr.bf16.mxu0 %v431_v25 }
  0x4b   :  { %283 = vmatpush2.bf16.msra.mxu0 %v433_v26 }
  0x4c   :  { %284 = vmatprep.subr.bf16.mxu0 %v434_v27 }
  0x4f   :  { %285 = vmatpush2.bf16.msra.mxu0 %v436_v28 }
  0x50   :  { %286 = vmatprep.subr.bf16.mxu0 %v437_v29 }
  0x53   :  { %287 = vmatpush2.bf16.msra.mxu0 %v439_v30 }
  0x54   :  { %288 = vmatprep.subr.bf16.mxu0 %v440_v31 }
  0x57   :  { %289 = vmatpush2.bf16.msra.mxu0 %v442_v32 }
  0x58   :  { %290 = vmatprep.subr.bf16.mxu0 %v443_v33 }
  0x5b   :  { %291 = vmatpush2.bf16.msra.mxu0 %v445_v34 }
  0x5e   :  { %293 = vmatmul.mubr.bf16.vlgmr.msra.gmra.mxu0 %v54_v37 }
 0x11e   :  { %v294_v45 = vpop.f32.mrf.mxu0 }
 0x11f   :  { %v295_v47 = vadd.f32 %v294_v45, %v93_v43 }
 0x120   :  { %v296_v48 = vpop.f32.mrf.mxu0 }
 0x121   :  { %v303_v49 = vmax.f32 %v295_v47, 0.0  ;;  %v297_v50 = vadd.f32 %v296_v48, %v97_v44 }
 0x122   :  { %v298_v53 = vpop.f32.mrf.mxu0 }
 0x123   :  { %v304_v54 = vmax.f32 %v297_v50, 0.0  ;;  %v299_v55 = vadd.f32 %v298_v53, %v93_v43  ;;  %v319_v59 = vmul.f32 %v312_v51, %v303_v49 }
 0x124   :  { %v300_v56 = vpop.f32.mrf.mxu0 }
 0x125   :  { %v305_v57 = vmax.f32 %v299_v55, 0.0  ;;  %v301_v58 = vadd.f32 %v300_v56, %v97_v44  ;;  %v320_v60 = vmul.f32 %v316_v52, %v304_v54 }
 0x127   :  { %v306_v61 = vmax.f32 %v301_v58, 0.0  ;;  %v323_v62 = vadd.f32 %v320_v60, %v319_v59  ;;  %v321_v63 = vmul.f32 %v312_v51, %v305_v57 }
 0x129   :  { %v322_v0 = vmul.f32 %v316_v52, %v306_v61  ;;  %324 = vadd.xlane.f32.xlu0 %v323_v62 }
 0x12b   :  { %v326_v1 = vadd.f32 %v322_v0, %v321_v63 }
 0x12d   :  { %327 = vadd.xlane.f32.xlu0 %v326_v1 }
 0x1b2   :  { %v325_v3 = vpop.xlane.xlu0 %324 }
 0x1b3   :  { %v331_v4 = vadd.f32 %v330_v2, %v325_v3 }
 0x1b5   :  { %v333_v5 = vmul.f32 %v331_v4, %v50_v35  ;;  %v334_v6 = vmul.f32 %v331_v4, %v558_v13 }
 0x1b6   :  { %v328_v7 = vpop.xlane.xlu0 %327 }
 0x1b7   :  { %337 = vst [vmem:[#allocation8] sm:$0xff] %v333_v5  ;;  %338 = vst [vmem:[#allocation8 + $0x8] sm:$0xff] %v334_v6  ;;  %v332_v8 = vadd.f32 %v330_v2, %v328_v7 }
 0x1b9   :  { %v335_v9 = vmul.f32 %v332_v8, %v52_v36  ;;  %v336_v10 = vmul.f32 %v332_v8, %v560_v14 }
 0x1bb   :  { %339 = vst [vmem:[#allocation8 + $0x10] sm:$0xff] %v335_v9  ;;  %340 = vst [vmem:[#allocation8 + $0x18] sm:$0xff] %v336_v10 }
 0x1bc   :  { %497 = shalt.err (!%p494_p0)
}
 0x1bd   :  { %352 = dma.vmem_to_hbm [thread:$0]  %s347_s10, 512, %s586_s5, [#allocation5], %s513_s21, %s513_s21, %s514_s22  }
 0x1be   :  { %510 = dma.done.wait [#allocation5], 512  }
 0x1bf   :  { %511 = vsyncadd [#allocation5], 4294966784 }
 0x1c0   :  { %356 = vsyncpa [#allocation4], 1 }
 0x1c1   :  { %357 = vsyncpa [#allocation7], 1 }
 0x1c2   :  { %358 = vsyncpa [#allocation5], 1 }

</bundles_post_ra>
